<compile_context>
chip_gen: v7x
topology: tpu7x:2x2x1
jax: 0.10.0
libtpu: 0.0.40
codegen_flags: <defaults>
</compile_context>

<pallas_src>
import functools

import jax
import jax.numpy as jnp
from jax import lax
from jax.experimental import pallas as pl
from jax.experimental.pallas import tpu as pltpu


def _round_up(x, m):
    return ((x + m - 1) // m) * m


def _tpu_vmem_capacity_bytes():
    """Physical VMEM per TensorCore (128 MiB v5e/v6e, 64 MiB v7x)."""
    try:
        cap = getattr(pltpu.get_tpu_info(), "vmem_capacity_bytes", None)
        if cap:
            return int(cap)
    except Exception:
        pass
    return 64 * 1024 * 1024  # conservative fallback (v7x per-TC size)


# ---------------------------------------------------------------------------
# Kernels
# ---------------------------------------------------------------------------
def _patch_proj_kernel(x_ref, w_ref, b_ref, o_ref):
    """Resident-weight path: (tm, K) @ (K, Ep) + bias, f32 MXU accumulation."""
    prec = lax.Precision.HIGHEST if x_ref.dtype == jnp.float32 else None
    acc = jnp.dot(x_ref[...], w_ref[...], precision=prec,
                  preferred_element_type=jnp.float32)
    o_ref[...] = (acc + b_ref[...]).astype(o_ref.dtype)


def _patch_proj_ktiled_kernel(x_ref, w_ref, b_ref, o_ref, acc_ref):
    """K-tiled fallback (large K*E): f32 VMEM accumulator across the K axis."""
    k = pl.program_id(1)

    @pl.when(k == 0)
    def _init():
        acc_ref[...] = jnp.zeros_like(acc_ref)

    prec = lax.Precision.HIGHEST if x_ref.dtype == jnp.float32 else None
    acc_ref[...] += jnp.dot(x_ref[...], w_ref[...], precision=prec,
                            preferred_element_type=jnp.float32)

    @pl.when(k == pl.num_programs(1) - 1)
    def _finalize():
        o_ref[...] = (acc_ref[...] + b_ref[...]).astype(o_ref.dtype)


# ---------------------------------------------------------------------------
# Tile / VMEM budgeting
# ---------------------------------------------------------------------------
def _resident_vmem_need(tm, K, Ep, in_isz, out_isz):
    # 2x input tile + 2x weight buffers (grid-invariant, DMA'd once per core but
    # double-allocated) + 2x output tile (OUTPUT dtype!) + 2x f32 bias.
    return in_isz * (2 * tm * K + 2 * K * Ep) + out_isz * 2 * tm * Ep + 4 * 2 * Ep


def _ktiled_vmem_need(tm, tk, Ep, in_isz, out_isz):
    # 2x input tile + 2x weight tile + 2x output tile + f32 acc scratch + bias.
    return (in_isz * 2 * tk * (tm + Ep) + out_isz * 2 * tm * Ep
            + 4 * tm * Ep + 4 * 2 * Ep)


def _choose_tm_resident(M, K, Ep, in_isz, out_isz, tm_req, budget, gran):
    cap = _round_up(M, gran)
    tm = max(gran, min(_round_up(tm_req, gran), cap))
    # Keep >= 2 grid steps when M is large enough so both v7x TensorCores get
    # work; round the split up to the MXU-friendly 128-row granule.
    if pl.cdiv(M, tm) < 2 and cap >= 256:
        tm = max(gran, _round_up(pl.cdiv(M, 2), gran))
    # Shrink until the double-buffered tiles + resident weight fit the budget.
    while tm > gran and _resident_vmem_need(tm, K, Ep, in_isz, out_isz) > budget:
        tm = max(gran, _round_up(tm // 2, gran))
    return tm


def _choose_tiles_ktiled(M, K, Ep, in_isz, out_isz, budget, gran, tk_req=None):
    tm = max(gran, min(512, _round_up(M, gran)))
    if tk_req is not None:
        tk = max(128, _round_up(tk_req, 128))
    else:
        tk = max(128, min(_round_up(K, 128), 2048))
        while tk > 128 and _ktiled_vmem_need(tm, tk, Ep, in_isz, out_isz) > budget:
            tk = max(128, _round_up(tk // 2, 128))
    while tm > gran and _ktiled_vmem_need(tm, tk, Ep, in_isz, out_isz) > budget:
        tm = max(gran, _round_up(tm // 2, gran))
    return tm, tk


# ---------------------------------------------------------------------------
# Pallas-call wrapper: patches @ weight + bias
# ---------------------------------------------------------------------------
def _patch_proj(patches, w_t, bias, *, out_dtype, tm_req=1024, k_tile=None,
                force_k_tiling=False, fuse_patch_extraction=True):
    """patches (M, K) @ w_t (K, E) + bias (E,) -> (M, E) in out_dtype."""
    M, K = patches.shape
    Kw, E = w_t.shape
    assert Kw == K

    compute_dtype = patches.dtype
    in_isz = jnp.dtype(compute_dtype).itemsize
    out_isz = jnp.dtype(out_dtype).itemsize

    # Lane-dense output: pad E to a multiple of 128 (Prithvi's 768/1024 already are).
    Ep = _round_up(E, 128)
    if Ep != E:
        w_t = jnp.pad(w_t, ((0, 0), (0, Ep - E)))
        bias = jnp.pad(bias, ((0, Ep - E),))
    w_t = w_t.astype(compute_dtype)
    b2 = bias.reshape(1, Ep).astype(jnp.float32)

    capacity = _tpu_vmem_capacity_bytes()
    budget = int(0.70 * capacity)        # ~90 MiB v5e/v6e, ~45 MiB per TC on v7x
    gran = 128 if M >= 128 else 8        # 128-row tiles keep the MXU unragged

    tm_floor = min(256, _round_up(M, gran))
    resident_ok = _resident_vmem_need(tm_floor, K, Ep, in_isz, out_isz) <= budget

    if resident_ok and not force_k_tiling:
        tm = _choose_tm_resident(M, K, Ep, in_isz, out_isz, tm_req, budget, gran)
        grid = (pl.cdiv(M, tm),)
        need = _resident_vmem_need(tm, K, Ep, in_isz, out_isz)
        cost = pl.CostEstimate(
            flops=2 * M * K * Ep, transcendentals=0,
            bytes_accessed=(M * K + K * Ep) * in_isz + M * Ep * out_isz + Ep * 4)
        out = pl.pallas_call(
            _patch_proj_kernel,
            out_shape=jax.ShapeDtypeStruct((M, Ep), out_dtype),
            grid_spec=pltpu.PrefetchScalarGridSpec(
                num_scalar_prefetch=0,
                grid=grid,
                in_specs=[
                    pl.BlockSpec((tm, K), lambda i: (i, 0)),   # patch-row tile
                    pl.BlockSpec((K, Ep), lambda i: (0, 0)),   # weight, grid-invariant
                    pl.BlockSpec((1, Ep), lambda i: (0, 0)),   # bias, grid-invariant
                ],
                out_specs=pl.BlockSpec((tm, Ep), lambda i: (i, 0)),
            ),
            compiler_params=pltpu.CompilerParams(
                dimension_semantics=("parallel",),
                vmem_limit_bytes=int(min(0.85 * capacity,
                                         max(32 << 20, need + (4 << 20)))),
                # Let XLA fuse the patch-extraction transpose into the input DMA;
                # profile per generation and flip the flag if the strided fused
                # gather loses to XLA's standalone transpose emitter.
                allow_input_fusion=[fuse_patch_extraction, False, False],
            ),
            cost_estimate=cost,
        )(patches, w_t, b2)
    else:
        # Weight too large for resident VMEM (or forced): tile K and accumulate.
        tm, tk = _choose_tiles_ktiled(M, K, Ep, in_isz, out_isz, budget, gran, k_tile)
        Kp = _round_up(K, tk)
        if Kp != K:   # zero-pad the reduction dim only (zeros are exact no-ops)
            patches = jnp.pad(patches, ((0, 0), (0, Kp - K)))
            w_t = jnp.pad(w_t, ((0, Kp - K), (0, 0)))
        grid = (pl.cdiv(M, tm), Kp // tk)
        need = _ktiled_vmem_need(tm, tk, Ep, in_isz, out_isz)
        cost = pl.CostEstimate(
            flops=2 * M * Kp * Ep, transcendentals=0,
            bytes_accessed=(M * Kp + grid[0] * Kp * Ep) * in_isz
                           + M * Ep * out_isz + Ep * 4)
        out = pl.pallas_call(
            _patch_proj_ktiled_kernel,
            out_shape=jax.ShapeDtypeStruct((M, Ep), out_dtype),
            grid_spec=pltpu.PrefetchScalarGridSpec(
                num_scalar_prefetch=0,
                grid=grid,
                in_specs=[
                    pl.BlockSpec((tm, tk), lambda i, k: (i, k)),
                    pl.BlockSpec((tk, Ep), lambda i, k: (k, 0)),
                    pl.BlockSpec((1, Ep), lambda i, k: (0, 0)),
                ],
                out_specs=pl.BlockSpec((tm, Ep), lambda i, k: (i, 0)),
                scratch_shapes=[pltpu.VMEM((tm, Ep), jnp.float32)],
            ),
            compiler_params=pltpu.CompilerParams(
                dimension_semantics=("parallel", "arbitrary"),
                vmem_limit_bytes=int(min(0.85 * capacity,
                                         max(32 << 20, need + (4 << 20)))),
                allow_input_fusion=[fuse_patch_extraction, False, False],
            ),
            cost_estimate=cost,
        )(patches, w_t, b2)

    if Ep != E:
        out = out[:, :E]
    return out


# ---------------------------------------------------------------------------
# PatchEmbed forward (wrapper)
# ---------------------------------------------------------------------------
def patch_embed_forward(x, weight, bias, *, tubelet_size, patch_size,
                        flatten=True, compute_dtype=jnp.bfloat16,
                        out_dtype=None, tm=1024, k_tile=None,
                        channels_last=False, force_k_tiling=False,
                        fuse_patch_extraction=True):
    """
    x      : (B, C, T, H, W) if not channels_last, else (B, T, H, W, C)
    weight : (E, C, tub, pH, pW)   -- torch Conv3d weight layout
    bias   : (E,)
    returns: (B, L, E) if flatten else (B, E, T', H', W')

    out_dtype=None -> compute_dtype (bf16 writeback halves the dominant HBM
    term on v6e/v7x).  Pass compute_dtype=out_dtype=jnp.float32 for strict
    parity with the f32 torch Conv3d.
    """
    tub = tubelet_size
    pH, pW = patch_size
    E = weight.shape[0]
    if channels_last:
        B, T, H, W, C = x.shape
    else:
        B, C, T, H, W = x.shape
    Tg, Hg, Wg = T // tub, H // pH, W // pW
    L = Tg * Hg * Wg
    K = C * tub * pH * pW
    if out_dtype is None:
        out_dtype = compute_dtype

    # Cast first so the patch-extraction transpose moves half the bytes.
    xc = x.astype(compute_dtype)
    if channels_last:
        # Innermost contiguous run is pW*C elements -> DMA-friendlier gather.
        xp = xc.reshape(B, Tg, tub, Hg, pH, Wg, pW, C)
        xp = xp.transpose(0, 1, 3, 5, 2, 4, 6, 7)       # (B,Tg,Hg,Wg,tub,pH,pW,C)
        w2 = jnp.transpose(weight, (0, 2, 3, 4, 1)).reshape(E, K)
    else:
        # torch NCTHW: per-patch flattening order (C,tub,pH,pW) matches the
        # Conv3d weight flattening exactly.
        xp = xc.reshape(B, C, Tg, tub, Hg, pH, Wg, pW)
        xp = xp.transpose(0, 2, 4, 6, 1, 3, 5, 7)       # (B,Tg,Hg,Wg,C,tub,pH,pW)
        w2 = weight.reshape(E, K)
    patches = xp.reshape(B * L, K)
    w_t = w2.T                                          # (K, E)

    out = _patch_proj(patches, w_t, bias, out_dtype=out_dtype, tm_req=tm,
                      k_tile=k_tile, force_k_tiling=force_k_tiling,
                      fuse_patch_extraction=fuse_patch_extraction)
    out = out.reshape(B, L, E)
    if not flatten:
        out = out.transpose(0, 2, 1).reshape(B, E, Tg, Hg, Wg)
    # norm_layer defaults to None -> nn.Identity(): nothing to do.
    return out


# ---------------------------------------------------------------------------
# Reference (pure JAX conv3d) for verification
# ---------------------------------------------------------------------------
def patch_embed_reference(x, weight, bias, *, tubelet_size, patch_size):
    y = lax.conv_general_dilated(
        x, weight,
        window_strides=(tubelet_size, patch_size[0], patch_size[1]),
        padding="VALID",
        dimension_numbers=("NCDHW", "OIDHW", "NCDHW"),
        precision=lax.Precision.HIGHEST,
    ) + bias.reshape(1, -1, 1, 1, 1)
    B, E = y.shape[0], y.shape[1]
    return y.reshape(B, E, -1).transpose(0, 2, 1)       # (B, L, E)


if __name__ == "__main__":
    # Small config consistent with the module's __init__:
    #   img_size=16, patch_size=8, num_frames=2, tubelet_size=1,
    #   in_chans=4, embed_dim=32  -> grid_size=(2,2,2), num_patches=8
    B, C, T, H, W = 2, 4, 2, 16, 16
    tubelet_size = 1
    patch_size = (8, 8)
    embed_dim = 32
    K = C * tubelet_size * patch_size[0] * patch_size[1]
    L = (T // tubelet_size) * (H // patch_size[0]) * (W // patch_size[1])

    key = jax.random.PRNGKey(0)
    kx, kw, kb = jax.random.split(key, 3)
    x = jax.random.normal(kx, (B, C, T, H, W), dtype=jnp.float32)
    weight = jax.random.normal(
        kw, (embed_dim, C, tubelet_size, patch_size[0], patch_size[1]),
        dtype=jnp.float32) * (1.0 / jnp.sqrt(K))
    bias = jax.random.normal(kb, (embed_dim,), dtype=jnp.float32) * 0.01

    # References: bf16-quantized-input reference for the fast paths, true f32
    # reference for the strict-parity path.
    xq = x.astype(jnp.bfloat16).astype(jnp.float32)
    wq = weight.astype(jnp.bfloat16).astype(jnp.float32)
    ref_bf16 = patch_embed_reference(xq, wq, bias, tubelet_size=tubelet_size,
                                     patch_size=patch_size)
    ref_f32 = patch_embed_reference(x, weight, bias, tubelet_size=tubelet_size,
                                    patch_size=patch_size)

    # 1) Default fast path: bf16 compute, bf16 writeback, resident weight.
    fwd = jax.jit(functools.partial(patch_embed_forward,
                                    tubelet_size=tubelet_size,
                                    patch_size=patch_size))
    out = jax.block_until_ready(fwd(x, weight, bias))
    assert out.shape == (B, L, embed_dim), out.shape
    assert out.dtype == jnp.bfloat16, out.dtype
    assert jnp.allclose(out.astype(jnp.float32), ref_bf16, atol=4e-2, rtol=4e-2), \
        float(jnp.max(jnp.abs(out.astype(jnp.float32) - ref_bf16)))

    # 2) Strict f32 parity path vs. the true f32 Conv3d reference.
    fwd32 = jax.jit(functools.partial(patch_embed_forward,
                                      tubelet_size=tubelet_size,
                                      patch_size=patch_size,
                                      compute_dtype=jnp.float32,
                                      out_dtype=jnp.float32))
    out32 = jax.block_until_ready(fwd32(x, weight, bias))
    assert out32.dtype == jnp.float32
    assert jnp.allclose(out32, ref_f32, atol=2e-3, rtol=2e-3), \
        float(jnp.max(jnp.abs(out32 - ref_f32)))

    # 3) K-tiled accumulator fallback (exercised with 2 K-steps).
    fwd_kt = jax.jit(functools.partial(patch_embed_forward,
                                       tubelet_size=tubelet_size,
                                       patch_size=patch_size,
                                       force_k_tiling=True, k_tile=128))
    out_kt = jax.block_until_ready(fwd_kt(x, weight, bias))
    assert jnp.allclose(out_kt.astype(jnp.float32), ref_bf16, atol=4e-2, rtol=4e-2)

    # 4) Channels-last calling convention (DMA-friendlier patch gather).
    x_cl = jnp.transpose(x, (0, 2, 3, 4, 1))            # (B, T, H, W, C)
    fwd_cl = jax.jit(functools.partial(patch_embed_forward,
                                       tubelet_size=tubelet_size,
                                       patch_size=patch_size,
                                       channels_last=True))
    out_cl = jax.block_until_ready(fwd_cl(x_cl, weight, bias))
    assert jnp.allclose(out_cl.astype(jnp.float32), ref_bf16, atol=4e-2, rtol=4e-2)

    print("KERNEL_OK")
</pallas_src>

<mosaic_0001>
module attributes {stable_mosaic.version = 11 : i64} {
  func.func @_patch_proj_kernel(%arg0: i32, %arg1: memref<16x256xbf16, #tpu.memory_space<vmem>>, %arg2: memref<256x128xbf16, #tpu.memory_space<vmem>>, %arg3: memref<1x128xf32, #tpu.memory_space<vmem>>, %arg4: memref<16x128xbf16, #tpu.memory_space<vmem>>) attributes {dimension_semantics = [#tpu.dimension_semantics<parallel>], iteration_bounds = array<i64: 1>, scalar_prefetch = 0 : i64, scratch_operands = 0 : i64, tpu.core_type = #tpu.core_type<tc>, window_params = [{transform_indices = @transform_0, window_bounds = array<i64: 16, 256>}, {pipeline_mode = #tpu.pipeline_mode<synchronous>, transform_indices = @transform_1, window_bounds = array<i64: 256, 128>}, {pipeline_mode = #tpu.pipeline_mode<synchronous>, transform_indices = @transform_2, window_bounds = array<i64: 1, 128>}, {transform_indices = @transform_3, window_bounds = array<i64: 16, 128>}]} {
    %c0 = arith.constant 0 : index
    %c0_0 = arith.constant 0 : index
    %0 = vector.load %arg1[%c0, %c0_0] : memref<16x256xbf16, #tpu.memory_space<vmem>>, vector<16x256xbf16>
    %c0_1 = arith.constant 0 : index
    %c0_2 = arith.constant 0 : index
    %1 = vector.load %arg2[%c0_1, %c0_2] : memref<256x128xbf16, #tpu.memory_space<vmem>>, vector<256x128xbf16>
    %cst = arith.constant dense<0.000000e+00> : vector<16x128xf32>
    %2 = tpu.matmul %0, %1, %cst {dimension_numbers = #tpu.dot_dimension_numbers<[1], [0], [0], [1], [0, 0, 1, 1], [], []>} : vector<16x256xbf16>, vector<256x128xbf16>, vector<16x128xf32> -> vector<16x128xf32>
    %c0_3 = arith.constant 0 : index
    %c0_4 = arith.constant 0 : index
    %3 = vector.load %arg3[%c0_3, %c0_4] : memref<1x128xf32, #tpu.memory_space<vmem>>, vector<1x128xf32>
    %4 = vector.broadcast %3 : vector<1x128xf32> to vector<16x128xf32>
    %5 = arith.addf %2, %4 : vector<16x128xf32>
    %6 = arith.truncf %5 : vector<16x128xf32> to vector<16x128xbf16>
    %c0_5 = arith.constant 0 : index
    %c0_6 = arith.constant 0 : index
    %7 = vector.load %arg4[%c0_5, %c0_6] : memref<16x128xbf16, #tpu.memory_space<vmem>>, vector<16x128xbf16>
    tpu.vector_store %arg4[%c0_5, %c0_6], %6 {strides = array<i32>} : memref<16x128xbf16, #tpu.memory_space<vmem>>, vector<16x128xbf16>,
    return
  }
  func.func @transform_0(%arg0: i32) -> (i32, i32) {
    %c0_i32 = arith.constant 0 : i32
    %c0_i32_0 = arith.constant 0 : i32
    return %arg0, %c0_i32 : i32, i32
  }
  func.func @transform_1(%arg0: i32) -> (i32, i32) {
    %c0_i32 = arith.constant 0 : i32
    %c0_i32_0 = arith.constant 0 : i32
    %c0_i32_1 = arith.constant 0 : i32
    return %c0_i32, %c0_i32_0 : i32, i32
  }
  func.func @transform_2(%arg0: i32) -> (i32, i32) {
    %c0_i32 = arith.constant 0 : i32
    %c0_i32_0 = arith.constant 0 : i32
    %c0_i32_1 = arith.constant 0 : i32
    return %c0_i32, %c0_i32_0 : i32, i32
  }
  func.func @transform_3(%arg0: i32) -> (i32, i32) {
    %c0_i32 = arith.constant 0 : i32
    %c0_i32_0 = arith.constant 0 : i32
    return %arg0, %c0_i32 : i32, i32
  }
}

</mosaic_0001>

<bundles_post_ra>
// kernel: patch_embed_forward.1
= control target key start
LH: loop header
LB: loop body
LE: loop exit
PB: predicated region body
PF: predicated region fallthrough
CT: control target
= control target key end

     0   :  { %s366_s1 = inlined_call_operand.vmem [shape: bf16[256,128], index: 1, kind: input, shape index: {}]   ;;  %s367_s0 = inlined_call_operand.vmem [shape: bf16[16,256], index: 0, kind: input, shape index: {}]   ;;  %s368_s2 = inlined_call_operand.vmem [shape: f32[1,128], index: 2, kind: input, shape index: {}]   ;;  %s369_s3 = inlined_call_operand.vmem [shape: bf16[16,128], index: 3, kind: output, shape index: {}]  }
   0x1   :  { %v267_v0 = vld [vmem:[%s366_s1 + $0x40] sm:$0xff]   ;;  %v269_v2 = vld [vmem:[%s366_s1 + $0x48] sm:$0xff]   ;;  %v271_v4 = vld [vmem:[%s366_s1 + $0x50] sm:$0xff]  }
   0x2   :  { %v268_v1 = vld [vmem:[%s366_s1] sm:$0xff]   ;;  %245 = vmatprep.subr.bf16.mxu0 %v267_v0  ;;  %v270_v3 = vld [vmem:[%s366_s1 + $0x8] sm:$0xff]   ;;  %v272_v5 = vld [vmem:[%s366_s1 + $0x10] sm:$0xff]  }
   0x3   :  { %246 = vmatpush3.bf16.msra.mxu0 %v268_v1  ;;  %v273_v6 = vld [vmem:[%s366_s1 + $0x58] sm:$0xff]   ;;  %v275_v8 = vld [vmem:[%s366_s1 + $0x60] sm:$0xff]   ;;  %v277_v10 = vld [vmem:[%s366_s1 + $0x68] sm:$0xff]  }
   0x4   :  { %247 = vmatprep.subr.bf16.mxu0 %v269_v2  ;;  %v274_v7 = vld [vmem:[%s366_s1 + $0x18] sm:$0xff]   ;;  %v276_v9 = vld [vmem:[%s366_s1 + $0x20] sm:$0xff]   ;;  %v278_v12 = vld [vmem:[%s366_s1 + $0x28] sm:$0xff]  }
   0x5   :  { %v285_v11 = vld [vmem:[%s367_s0 + $0x4] ss:$8 sps:$4 sm:$0xff]   ;;  %v279_v13 = vld [vmem:[%s366_s1 + $0x70] sm:$0xff]   ;;  %v281_v15 = vld [vmem:[%s366_s1 + $0x78] sm:$0xff]  }
   0x6   :  { %194 = vmatprep.mubr.bf16.mxu0 %v285_v11  ;;  %v280_v14 = vld [vmem:[%s366_s1 + $0x30] sm:$0xff]   ;;  %v282_v16 = vld [vmem:[%s366_s1 + $0x38] sm:$0xff]   ;;  %v283_v17 = vld [vmem:[%s367_s0] ss:$8 sps:$4 sm:$0xff]  }
   0x7   :  { %248 = vmatpush3.bf16.msra.mxu0 %v270_v3  ;;  %v217_v22 = vld [vmem:[%s368_s2] ss:$0 sm:$0xff] }
   0x8   :  { %249 = vmatprep.subr.bf16.mxu0 %v271_v4 }
   0xb   :  { %250 = vmatpush3.bf16.msra.mxu0 %v272_v5 }
   0xc   :  { %251 = vmatprep.subr.bf16.mxu0 %v273_v6 }
   0xf   :  { %252 = vmatpush3.bf16.msra.mxu0 %v274_v7 }
  0x10   :  { %253 = vmatprep.subr.bf16.mxu0 %v275_v8 }
  0x13   :  { %254 = vmatpush3.bf16.msra.mxu0 %v276_v9 }
  0x14   :  { %255 = vmatprep.subr.bf16.mxu0 %v277_v10 }
  0x17   :  { %256 = vmatpush3.bf16.msra.mxu0 %v278_v12 }
  0x18   :  { %257 = vmatprep.subr.bf16.mxu0 %v279_v13 }
  0x1b   :  { %258 = vmatpush3.bf16.msra.mxu0 %v280_v14 }
  0x1c   :  { %259 = vmatprep.subr.bf16.mxu0 %v281_v15 }
  0x1f   :  { %260 = vmatpush3.bf16.msra.mxu0 %v282_v16 }
  0x22   :  { %195 = vmatmul.mubr.bf16.vlgmr.msra.gmra.mrb[0].mxu0 %v283_v17 }
  0xf5   :  { %v261_v18 = vpop.f32.mrb[0].mxu0 }
  0xf6   :  { %v262_v19 = vpop.f32.mrb[1].mxu0 }
  0xf7   :  { %v263_v20 = vadd.f32 %v262_v19, %v261_v18  ;;  %v264_v21 = vpop.f32.mrb[2].mxu0 }
  0xf8   :  { %v265_v23 = vpop.f32.mrb[3].mxu0 }
  0xf9   :  { %v266_v24 = vadd.f32 %v265_v23, %v264_v21  ;;  %v197_v25 = vadd.f32 %v263_v20, %v217_v22 }
  0xfb   :  { %v200_v26 = vadd.f32 %v266_v24, %v217_v22 }
  0xfd   :  { %v243_v27 = vpack.c.bf16 %v200_v26, %v197_v25 }
  0xff   :  { %244 = vst [vmem:[%s369_s3] sm:$0xff] %v243_v27  }

</bundles_post_ra>
